<compile_context>
chip_gen: v6e
topology: v6e:2x2x1
jax: 0.10.0
libtpu: 0.0.40
codegen_flags: <defaults>
</compile_context>

<pallas_src>
import functools

import jax
import jax.numpy as jnp
from jax.experimental import pallas as pl
from jax.experimental.pallas import tpu as pltpu

_LANE = 128      # TPU lane width
_TB_MAX = 1024   # max batch-tile rows
_OUT_PAD = 8     # padded output lane width (6 real logits)


def _cdiv(a, b):
    return -(-a // b)


def _pad_to(n, m):
    return _cdiv(n, m) * m


def _pad2d(a, rows, cols):
    return jnp.pad(a, ((0, rows - a.shape[0]), (0, cols - a.shape[1])))


def _bf16_elementwise_supported():
    """bf16 VALU exists on v6e/v7x; keep the f32 elementwise path on <= v5e."""
    try:
        kind = jax.devices()[0].device_kind.lower()
    except Exception:
        return False
    if "tpu" not in kind:
        return False
    return not any(t in kind for t in ("v2", "v3", "v4", "v5"))


def _choose_tile(B):
    """Batch-tile rows: >= 8, >= 2 grid steps for moderate B, capped at _TB_MAX."""
    B8 = max(_pad_to(B, 8), 8)
    if B8 <= 8:
        return 8
    half = _pad_to(_cdiv(B8, 2), 8)   # 2-way split -> both v7x TCs get work
    return min(_TB_MAX, half)


def _mlp_kernel(x_ref, w1_ref, w_ref, b_ref, o_ref, *, bf16_ew):
    # Whole layer stack fits in VMEM: 4 back-to-back bf16 MXU matmuls with f32
    # accumulation. x arrives as f32 and is cast to bf16 here (hides under MXU).
    b = b_ref[...]                                              # (4, 128) f32
    x = x_ref[...].astype(jnp.bfloat16)                         # (tb, DP)
    h = jnp.dot(x, w1_ref[...], preferred_element_type=jnp.float32)
    if bf16_ew:
        # v6e/v7x: bf16 VALU -> half the elementwise bundle count.
        bb = b.astype(jnp.bfloat16)                             # padded entries stay 0
        h = jnp.maximum(h.astype(jnp.bfloat16) + bb[0:1, :], 0)
        h = jnp.dot(h, w_ref[0], preferred_element_type=jnp.float32)
        h = jnp.maximum(h.astype(jnp.bfloat16) + bb[1:2, :], 0)
        h = jnp.dot(h, w_ref[1], preferred_element_type=jnp.float32)
        h = jnp.maximum(h.astype(jnp.bfloat16) + bb[2:3, :], 0)
        h = jnp.dot(h, w_ref[2], preferred_element_type=jnp.float32)
    else:
        # v5e and older: no bf16 VALU, keep bias/ReLU in f32.
        h = jnp.maximum(h + b[0:1, :], 0.0)
        h = jnp.dot(h.astype(jnp.bfloat16), w_ref[0], preferred_element_type=jnp.float32)
        h = jnp.maximum(h + b[1:2, :], 0.0)
        h = jnp.dot(h.astype(jnp.bfloat16), w_ref[1], preferred_element_type=jnp.float32)
        h = jnp.maximum(h + b[2:3, :], 0.0)
        h = jnp.dot(h.astype(jnp.bfloat16), w_ref[2], preferred_element_type=jnp.float32)
    h = h + b[3:4, :]                                           # final bias in f32
    o_ref[...] = h[:, : o_ref.shape[1]]                         # (tb, 8) store


def init_bomb_net_params(key, h, w, dtype=jnp.float32):
    """Deterministic PyTorch-Linear-style init: U(-1/sqrt(fan_in), 1/sqrt(fan_in)).

    Weights stored (in, out), so y = x @ W + b == torch's x @ W.T + b.
    """
    dims = [h * w, 120, 40, 12, 6]
    params = {}
    for i, (fin, fout) in enumerate(zip(dims[:-1], dims[1:]), start=1):
        key, kw, kb = jax.random.split(key, 3)
        bound = 1.0 / jnp.sqrt(jnp.asarray(fin, dtype))
        params[f"w{i}"] = jax.random.uniform(kw, (fin, fout), dtype, -bound, bound)
        params[f"b{i}"] = jax.random.uniform(kb, (fout,), dtype, -bound, bound)
    return params


def prepare_bomb_net_params(params):
    """One-time padding / stacking / casting of the weights for the kernel.

    Zero padding is inert through the bias+ReLU+matmul chain (padded bias
    entries are exactly 0, in f32 and in bf16).
    """
    d_in = params["w1"].shape[0]
    dp = _pad_to(d_in, _LANE)
    w1 = _pad2d(params["w1"], dp, _LANE).astype(jnp.bfloat16)          # (DP,128)
    w234 = jnp.stack([
        _pad2d(params["w2"], _LANE, _LANE),
        _pad2d(params["w3"], _LANE, _LANE),
        _pad2d(params["w4"], _LANE, _LANE),
    ]).astype(jnp.bfloat16)                                            # (3,128,128)
    biases = jnp.stack([
        jnp.pad(params[f"b{i}"].astype(jnp.float32),
                (0, _LANE - params[f"b{i}"].shape[0]))
        for i in (1, 2, 3, 4)
    ])                                                                 # (4,128) f32
    return {"w1": w1, "w234": w234, "b": biases}


@jax.jit
def bomb_net_forward(x, prepared):
    B = x.shape[0]
    xf = x.reshape(B, -1).astype(jnp.float32)          # flatten(start_dim=1)
    d_in = xf.shape[1]
    DP = prepared["w1"].shape[0]
    if d_in != DP:                                     # only if h*w % 128 != 0
        xf = jnp.pad(xf, ((0, 0), (0, DP - d_in)))

    tb = _choose_tile(B)
    grid = (_cdiv(B, tb),)                             # ragged tail handled by Pallas
    bf16_ew = _bf16_elementwise_supported()            # trace-time static choice
    kernel = functools.partial(_mlp_kernel, bf16_ew=bf16_ew)

    out = pl.pallas_call(
        kernel,
        out_shape=jax.ShapeDtypeStruct((B, _OUT_PAD), jnp.float32),
        grid=grid,
        in_specs=[
            pl.BlockSpec((tb, DP), lambda i: (i, 0)),              # x tile (f32)
            pl.BlockSpec((DP, _LANE), lambda i: (0, 0)),           # w1 resident
            pl.BlockSpec((3, _LANE, _LANE), lambda i: (0, 0, 0)),  # w2/w3/w4 resident
            pl.BlockSpec((4, _LANE), lambda i: (0, 0)),            # biases resident
        ],
        out_specs=pl.BlockSpec((tb, _OUT_PAD), lambda i: (i, 0)),
        compiler_params=pltpu.CompilerParams(
            dimension_semantics=("parallel",)),
    )(xf, prepared["w1"], prepared["w234"], prepared["b"])

    return out[:, :6]


def bomb_net_forward_ref(x, params):
    """Plain-JAX f32 reference mirroring the PyTorch forward."""
    t = x.reshape(x.shape[0], -1).astype(jnp.float32)
    t = jax.nn.relu(t @ params["w1"] + params["b1"])
    t = jax.nn.relu(t @ params["w2"] + params["b2"])
    t = jax.nn.relu(t @ params["w3"] + params["b3"])
    return t @ params["w4"] + params["b4"]


if __name__ == "__main__":
    H, W = 16, 16
    key = jax.random.PRNGKey(0)
    key, kx1, kx2 = jax.random.split(key, 3)

    params = init_bomb_net_params(key, H, W)
    prepared = prepare_bomb_net_params(params)            # one-time prep

    # Primary small case (B=2) + a ragged-tail / multi-grid-step case (B=19).
    for kx, B in ((kx1, 2), (kx2, 19)):
        x = jax.random.normal(kx, (B, H, W), jnp.float32)  # layout: (B, H, W)
        out = jax.block_until_ready(bomb_net_forward(x, prepared))
        ref = bomb_net_forward_ref(x, params)
        assert out.shape == (B, 6), out.shape
        # bf16 weights/activations with f32 accumulation -> loosened tolerance.
        assert jnp.allclose(out, ref, atol=4e-2, rtol=4e-2), (
            float(jnp.max(jnp.abs(out - ref))))

    print("KERNEL_OK")
</pallas_src>

<mosaic_0001>
module attributes {stable_mosaic.version = 11 : i64} {
  func.func @_mlp_kernel(%arg0: i32, %arg1: memref<8x256xf32, #tpu.memory_space<vmem>>, %arg2: memref<256x128xbf16, #tpu.memory_space<vmem>>, %arg3: memref<3x128x128xbf16, #tpu.memory_space<vmem>>, %arg4: memref<4x128xf32, #tpu.memory_space<vmem>>, %arg5: memref<8x8xf32, #tpu.memory_space<vmem>>) attributes {dimension_semantics = [#tpu.dimension_semantics<parallel>], iteration_bounds = array<i64: 1>, scalar_prefetch = 0 : i64, scratch_operands = 0 : i64, tpu.core_type = #tpu.core_type<tc>, window_params = [{transform_indices = @transform_0, window_bounds = array<i64: 8, 256>}, {pipeline_mode = #tpu.pipeline_mode<synchronous>, transform_indices = @transform_1, window_bounds = array<i64: 256, 128>}, {pipeline_mode = #tpu.pipeline_mode<synchronous>, transform_indices = @transform_2, window_bounds = array<i64: 3, 128, 128>}, {pipeline_mode = #tpu.pipeline_mode<synchronous>, transform_indices = @transform_3, window_bounds = array<i64: 4, 128>}, {transform_indices = @transform_4, window_bounds = array<i64: 8, 8>}]} {
    %c0 = arith.constant 0 : index
    %c0_0 = arith.constant 0 : index
    %0 = vector.load %arg4[%c0, %c0_0] : memref<4x128xf32, #tpu.memory_space<vmem>>, vector<4x128xf32>
    %c0_1 = arith.constant 0 : index
    %c0_2 = arith.constant 0 : index
    %1 = vector.load %arg1[%c0_1, %c0_2] : memref<8x256xf32, #tpu.memory_space<vmem>>, vector<8x256xf32>
    %2 = arith.truncf %1 : vector<8x256xf32> to vector<8x256xbf16>
    %c0_3 = arith.constant 0 : index
    %c0_4 = arith.constant 0 : index
    %3 = vector.load %arg2[%c0_3, %c0_4] : memref<256x128xbf16, #tpu.memory_space<vmem>>, vector<256x128xbf16>
    %cst = arith.constant dense<0.000000e+00> : vector<8x128xf32>
    %4 = tpu.matmul %2, %3, %cst {dimension_numbers = #tpu.dot_dimension_numbers<[1], [0], [0], [1], [0, 0, 1, 1], [], []>} : vector<8x256xbf16>, vector<256x128xbf16>, vector<8x128xf32> -> vector<8x128xf32>
    %5 = vector.extract_strided_slice %0 {offsets = [0, 0], sizes = [1, 128], strides = [1, 1]} : vector<4x128xf32> to vector<1x128xf32>
    %6 = vector.broadcast %5 : vector<1x128xf32> to vector<8x128xf32>
    %7 = arith.addf %4, %6 : vector<8x128xf32>
    %cst_5 = arith.constant 0.000000e+00 : f32
    %8 = vector.broadcast %cst_5 : f32 to vector<8x128xf32>
    %9 = arith.maximumf %7, %8 : vector<8x128xf32>
    %10 = arith.truncf %9 : vector<8x128xf32> to vector<8x128xbf16>
    %c0_6 = arith.constant 0 : index
    %c0_7 = arith.constant 0 : index
    %c0_8 = arith.constant 0 : index
    %11 = vector.load %arg3[%c0_6, %c0_7, %c0_8] : memref<3x128x128xbf16, #tpu.memory_space<vmem>>, vector<1x128x128xbf16>
    %12 = vector.shape_cast %11 : vector<1x128x128xbf16> to vector<128x128xbf16>
    %cst_9 = arith.constant dense<0.000000e+00> : vector<8x128xf32>
    %13 = tpu.matmul %10, %12, %cst_9 {dimension_numbers = #tpu.dot_dimension_numbers<[1], [0], [0], [1], [0, 0, 1, 1], [], []>} : vector<8x128xbf16>, vector<128x128xbf16>, vector<8x128xf32> -> vector<8x128xf32>
    %14 = vector.extract_strided_slice %0 {offsets = [1, 0], sizes = [1, 128], strides = [1, 1]} : vector<4x128xf32> to vector<1x128xf32>
    %15 = vector.broadcast %14 : vector<1x128xf32> to vector<8x128xf32>
    %16 = arith.addf %13, %15 : vector<8x128xf32>
    %cst_10 = arith.constant 0.000000e+00 : f32
    %17 = vector.broadcast %cst_10 : f32 to vector<8x128xf32>
    %18 = arith.maximumf %16, %17 : vector<8x128xf32>
    %19 = arith.truncf %18 : vector<8x128xf32> to vector<8x128xbf16>
    %c1 = arith.constant 1 : index
    %c0_11 = arith.constant 0 : index
    %c0_12 = arith.constant 0 : index
    %20 = vector.load %arg3[%c1, %c0_11, %c0_12] : memref<3x128x128xbf16, #tpu.memory_space<vmem>>, vector<1x128x128xbf16>
    %21 = vector.shape_cast %20 : vector<1x128x128xbf16> to vector<128x128xbf16>
    %cst_13 = arith.constant dense<0.000000e+00> : vector<8x128xf32>
    %22 = tpu.matmul %19, %21, %cst_13 {dimension_numbers = #tpu.dot_dimension_numbers<[1], [0], [0], [1], [0, 0, 1, 1], [], []>} : vector<8x128xbf16>, vector<128x128xbf16>, vector<8x128xf32> -> vector<8x128xf32>
    %23 = vector.extract_strided_slice %0 {offsets = [2, 0], sizes = [1, 128], strides = [1, 1]} : vector<4x128xf32> to vector<1x128xf32>
    %24 = vector.broadcast %23 : vector<1x128xf32> to vector<8x128xf32>
    %25 = arith.addf %22, %24 : vector<8x128xf32>
    %cst_14 = arith.constant 0.000000e+00 : f32
    %26 = vector.broadcast %cst_14 : f32 to vector<8x128xf32>
    %27 = arith.maximumf %25, %26 : vector<8x128xf32>
    %28 = arith.truncf %27 : vector<8x128xf32> to vector<8x128xbf16>
    %c2 = arith.constant 2 : index
    %c0_15 = arith.constant 0 : index
    %c0_16 = arith.constant 0 : index
    %29 = vector.load %arg3[%c2, %c0_15, %c0_16] : memref<3x128x128xbf16, #tpu.memory_space<vmem>>, vector<1x128x128xbf16>
    %30 = vector.shape_cast %29 : vector<1x128x128xbf16> to vector<128x128xbf16>
    %cst_17 = arith.constant dense<0.000000e+00> : vector<8x128xf32>
    %31 = tpu.matmul %28, %30, %cst_17 {dimension_numbers = #tpu.dot_dimension_numbers<[1], [0], [0], [1], [0, 0, 1, 1], [], []>} : vector<8x128xbf16>, vector<128x128xbf16>, vector<8x128xf32> -> vector<8x128xf32>
    %32 = vector.extract_strided_slice %0 {offsets = [3, 0], sizes = [1, 128], strides = [1, 1]} : vector<4x128xf32> to vector<1x128xf32>
    %33 = vector.broadcast %32 : vector<1x128xf32> to vector<8x128xf32>
    %34 = arith.addf %31, %33 : vector<8x128xf32>
    %35 = vector.extract_strided_slice %34 {offsets = [0, 0], sizes = [8, 8], strides = [1, 1]} : vector<8x128xf32> to vector<8x8xf32>
    %c0_18 = arith.constant 0 : index
    %c0_19 = arith.constant 0 : index
    %36 = vector.load %arg5[%c0_18, %c0_19] : memref<8x8xf32, #tpu.memory_space<vmem>>, vector<8x8xf32>
    tpu.vector_store %arg5[%c0_18, %c0_19], %35 {strides = array<i32>} : memref<8x8xf32, #tpu.memory_space<vmem>>, vector<8x8xf32>,
    return
  }
  func.func @transform_0(%arg0: i32) -> (i32, i32) {
    %c0_i32 = arith.constant 0 : i32
    %c0_i32_0 = arith.constant 0 : i32
    return %arg0, %c0_i32 : i32, i32
  }
  func.func @transform_1(%arg0: i32) -> (i32, i32) {
    %c0_i32 = arith.constant 0 : i32
    %c0_i32_0 = arith.constant 0 : i32
    %c0_i32_1 = arith.constant 0 : i32
    return %c0_i32, %c0_i32_0 : i32, i32
  }
  func.func @transform_2(%arg0: i32) -> (i32, i32, i32) {
    %c0_i32 = arith.constant 0 : i32
    %c0_i32_0 = arith.constant 0 : i32
    %c0_i32_1 = arith.constant 0 : i32
    %c0_i32_2 = arith.constant 0 : i32
    return %c0_i32, %c0_i32_0, %c0_i32_1 : i32, i32, i32
  }
  func.func @transform_3(%arg0: i32) -> (i32, i32) {
    %c0_i32 = arith.constant 0 : i32
    %c0_i32_0 = arith.constant 0 : i32
    %c0_i32_1 = arith.constant 0 : i32
    return %c0_i32, %c0_i32_0 : i32, i32
  }
  func.func @transform_4(%arg0: i32) -> (i32, i32) {
    %c0_i32 = arith.constant 0 : i32
    %c0_i32_0 = arith.constant 0 : i32
    return %arg0, %c0_i32 : i32, i32
  }
}

</mosaic_0001>

<bundles_post_ra>
// kernel: bomb_net_forward.1
= control target key start
LH: loop header
LB: loop body
LE: loop exit
PB: predicated region body
PF: predicated region fallthrough
CT: control target
= control target key end

     0   :  { %9 = vsyncpa [#allocation3], 0  ;;  %s959_s0 = inlined_call_operand.vmem [shape: f32[2,256], index: 0, kind: input, shape index: {}]   ;;  %s960_s1 = inlined_call_operand.hbm [shape: bf16[256,128], index: 1, kind: input, shape index: {}]   ;;  %s961_s2 = inlined_call_operand.hbm [shape: bf16[3,128,128], index: 2, kind: input, shape index: {}]   ;;  %s962_s3 = inlined_call_operand.vmem [shape: f32[4,128], index: 3, kind: input, shape index: {}]   ;;  %s963_s4 = inlined_call_operand.hbm [shape: f32[2,8], index: 4, kind: output, shape index: {}]  }
   0x1   :  { %10 = vsyncpa [#allocation6], 0 }
   0x2   :  { %11 = vsyncpa [#allocation4], 0  ;;  %s871_s15 = smov [#allocation2]  }
   0x3   :  { %s19_s16 = sshll.u32 %s871_s15, 4  ;;  %s20_s16 = int_to_ptr.vmem [resolvable:$true] %s19_s16 }
   0x4   :  { %s813_s17 = scalar_lea.vmem %s20_s16, 2048  ;;  %p818_p1 = scmp.lt.s32.totalorder %s20_s16, %s20_s16 }
   0x5   :  { %p814_p0 = scmp.ne.s32.totalorder %s20_s16, %s813_s17  ;;  %p819_p2 = scmp.lt.s32.totalorder %s813_s17, %s813_s17 }
   0x7   :  { %p820_p3 = por %p819_p2, %p818_p1 }
   0x9   :  { %p821_p4 = pnand %p820_p3, %p814_p0 }
   0xb   :  { %824 = shalt.err (!%p821_p4)
}
   0xc   :  { %s872_s18 = smov 64   ;;  %s873_s19 = smov 4  }
   0xd   :  { %25 = dma.hbm_to_vmem [thread:$0]  %s960_s1, 2048, %s20_s16, [#allocation3], %s872_s18, %s872_s18, %s873_s19  }
   0xe   :  { %s874_s22 = smov [#allocation5]  }
   0xf   :  { %s31_s23 = sshll.u32 %s874_s22, 4  ;;  %s32_s23 = int_to_ptr.vmem [resolvable:$true] %s31_s23 }
  0x10   :  { %s833_s24 = scalar_lea.vmem %s32_s23, 3072  ;;  %p838_p6 = scmp.lt.s32.totalorder %s32_s23, %s32_s23 }
  0x11   :  { %p834_p5 = scmp.ne.s32.totalorder %s32_s23, %s833_s24  ;;  %p839_p7 = scmp.lt.s32.totalorder %s833_s24, %s833_s24 }
  0x13   :  { %p840_p8 = por %p839_p7, %p838_p6 }
  0x15   :  { %p841_p9 = pnand %p840_p8, %p834_p5 }
  0x17   :  { %844 = shalt.err (!%p841_p9)
}
  0x18   :  { %37 = dma.hbm_to_vmem [thread:$0]  %s961_s2, 3072, %s32_s23, [#allocation6], %s872_s18, %s872_s18, %s873_s19  }
  0x19   :  { %865 = dma.done.wait [#allocation3], 2048  }
  0x1a   :  { %866 = vsyncadd [#allocation3], 4294965248 }
  0x1b   :  { %867 = dma.done.wait [#allocation6], 3072  }
  0x1c   :  { %868 = vsyncadd [#allocation6], 4294964224  ;;  %v875_v0 = vmov 0.0   ;;  %v761_v1 = vld [vmem:[#allocation2 + $0x78] sm:$0xff]   ;;  %v763_v3 = vld [vmem:[#allocation2 + $0x70] sm:$0xff]   ;;  %v61_v7 = vlaneseq  ;;  %vm876_vm0 = vmmov 0  }
  0x1d   :  { %691 = vmatprep.subr.bf16.mxu1 %v875_v0  ;;  %v762_v2 = vld [vmem:[#allocation2 + $0x38] sm:$0xff]   ;;  %642 = vmatprep.subr.bf16.mxu0 %v761_v1  ;;  %v764_v4 = vld [vmem:[#allocation2 + $0x30] sm:$0xff]   ;;  %v765_v5 = vld [vmem:[#allocation2 + $0x68] sm:$0xff]   ;;  %vm582_vm1 = vcmask 64512  }
  0x1e   :  { %643 = vmatpush3.bf16.msra.mxu0 %v762_v2  ;;  %v766_v6 = vld [vmem:[#allocation2 + $0x28] sm:$0xff]   ;;  %v767_v8 = vld [vmem:[#allocation2 + $0x60] sm:$0xff]   ;;  %v912_v10 = vshrl.u32 %v61_v7, 7  ;;  %v769_v11 = vld [vmem:[#allocation2 + $0x58] sm:$0xff]   ;;  %707 = vmatprep.mubr.msk.bf16.mxu1 %vm876_vm0, %v875_v0 }
  0x1f   :  { %644 = vmatprep.subr.bf16.mxu0 %v763_v3  ;;  %v768_v9 = vld [vmem:[#allocation2 + $0x20] sm:$0xff]   ;;  %v770_v12 = vld [vmem:[#allocation2 + $0x18] sm:$0xff]   ;;  %v771_v13 = vld [vmem:[#allocation2 + $0x50] sm:$0xff]  }
  0x20   :  { %v772_v14 = vld [vmem:[#allocation2 + $0x10] sm:$0xff]   ;;  %v803_v15 = vld.sshfl [vmem:[%s959_s0] sm:$0xff pattern:$0x76325410]  ;;  %v779_v17 = vld [vmem:[#allocation5 + $0x38] sm:$0xff]   ;;  %v112_v39 = vsub.s32 0, %v912_v10 }
  0x21   :  { %v804_v16 = vld.sshfl [vmem:[%s959_s0 + $0x8] sm:$0xff pattern:$0x76325410]  ;;  %692 = vmatpush3.bf16.msra.mxu1 %v779_v17  ;;  %v780_v19 = vld [vmem:[#allocation5 + $0x30] sm:$0xff]   ;;  %v775_v22 = vld [vmem:[#allocation2 + $0x40] sm:$0xff]   ;;  %v270_v58 = vsub.s32 1, %v912_v10 }
  0x22   :  { %645 = vmatpush3.bf16.msra.mxu0 %v764_v4  ;;  %v773_v18 = vld [vmem:[#allocation2 + $0x48] sm:$0xff]   ;;  %v73_v21 = vcombine.high %v803_v15, %v804_v16  ;;  %693 = vmatprep.subr.bf16.mxu1 %v875_v0  ;;  %v776_v25 = vld [vmem:[#allocation2] sm:$0xff]   ;;  %v72_v26 = vcombine.low %v803_v15, %v804_v16  ;;  %v783_v29 = vld [vmem:[#allocation5 + $0x18] sm:$0xff]   ;;  %v492_v16 = vsub.s32 3, %v912_v10 }
  0x23   :  { %646 = vmatprep.subr.bf16.mxu0 %v765_v5  ;;  %v774_v20 = vld [vmem:[#allocation2 + $0x8] sm:$0xff]   ;;  %v782_v27 = vld [vmem:[#allocation5 + $0x20] sm:$0xff]   ;;  %v784_v30 = vld [vmem:[#allocation5 + $0x10] sm:$0xff]  }
  0x24   :  { %v781_v23 = vld [vmem:[#allocation5 + $0x28] sm:$0xff]   ;;  %v77_v24 = vpack.c.bf16 %v73_v21, %v73_v21  ;;  %v76_v28 = vpack.c.bf16 %v72_v26, %v72_v26  ;;  %v786_v32 = vld [vmem:[#allocation5] sm:$0xff]   ;;  %v787_v33 = vld [vmem:[#allocation5 + $0x78] sm:$0xff]  }
  0x25   :  { %694 = vmatpush3.bf16.msra.mxu1 %v780_v19  ;;  %v785_v31 = vld [vmem:[#allocation5 + $0x8] sm:$0xff]   ;;  %v788_v34 = vld [vmem:[#allocation5 + $0x70] sm:$0xff]   ;;  %v790_v36 = vld [vmem:[#allocation5 + $0x60] sm:$0xff]  }
  0x26   :  { %647 = vmatpush3.bf16.msra.mxu0 %v766_v6  ;;  %242 = vmatprep.mubr.bf16.mxu0 %v77_v24  ;;  %v789_v35 = vld [vmem:[#allocation5 + $0x68] sm:$0xff]   ;;  %v791_v37 = vld [vmem:[#allocation5 + $0x58] sm:$0xff]   ;;  %v792_v38 = vld [vmem:[#allocation5 + $0x50] sm:$0xff]   ;;  %v381_v6 = vsub.s32 2, %v912_v10 }
  0x27   :  { %648 = vmatprep.subr.bf16.mxu0 %v767_v8  ;;  %695 = vmatprep.subr.bf16.mxu1 %v875_v0  ;;  %v47_v40 = vld [vmem:[%s962_s3] sm:$0xf]  ;;  %v793_v50 = vld [vmem:[#allocation5 + $0x48] sm:$0xff]   ;;  %v795_v52 = vld [vmem:[#allocation5 + $0xb8] sm:$0xff]  }
  0x28   :  { %v113_v42 = vrot.slane %v47_v40, %v112_v39  ;;  %v794_v51 = vld [vmem:[#allocation5 + $0x40] sm:$0xff]   ;;  %v796_v53 = vld [vmem:[#allocation5 + $0xb0] sm:$0xff]   ;;  %v797_v54 = vld [vmem:[#allocation5 + $0xa8] sm:$0xff]   ;;  %v271_v59 = vrot.slane %v47_v40, %v270_v58  ;;  %v382_v7 = vrot.slane %v47_v40, %v381_v6  ;;  %v493_v17 = vrot.slane %v47_v40, %v492_v16 }
  0x29   :  { %696 = vmatpush3.bf16.msra.mxu1 %v781_v23  ;;  %v798_v55 = vld [vmem:[#allocation5 + $0xa0] sm:$0xff]   ;;  %v799_v56 = vld [vmem:[#allocation5 + $0x98] sm:$0xff]   ;;  %v800_v57 = vld [vmem:[#allocation5 + $0x90] sm:$0xff]  }
  0x2a   :  { %649 = vmatpush3.bf16.msra.mxu0 %v768_v9  ;;  %697 = vmatprep.subr.bf16.mxu1 %v875_v0  ;;  %v801_v4 = vld [vmem:[#allocation5 + $0x88] sm:$0xff]   ;;  %v802_v5 = vld [vmem:[#allocation5 + $0x80] sm:$0xff]  }
  0x2b   :  { %650 = vmatprep.subr.bf16.mxu0 %v769_v11 }
  0x2d   :  { %698 = vmatpush3.bf16.msra.mxu1 %v782_v27 }
  0x2e   :  { %651 = vmatpush3.bf16.msra.mxu0 %v770_v12  ;;  %699 = vmatprep.subr.bf16.mxu1 %v875_v0 }
  0x2f   :  { %652 = vmatprep.subr.bf16.mxu0 %v771_v13 }
  0x31   :  { %700 = vmatpush3.bf16.msra.mxu1 %v783_v29 }
  0x32   :  { %653 = vmatpush3.bf16.msra.mxu0 %v772_v14  ;;  %701 = vmatprep.subr.bf16.mxu1 %v875_v0 }
  0x33   :  { %654 = vmatprep.subr.bf16.mxu0 %v773_v18 }
  0x35   :  { %702 = vmatpush3.bf16.msra.mxu1 %v784_v30 }
  0x36   :  { %655 = vmatpush3.bf16.msra.mxu0 %v774_v20  ;;  %703 = vmatprep.subr.bf16.mxu1 %v875_v0 }
  0x37   :  { %656 = vmatprep.subr.bf16.mxu0 %v775_v22 }
  0x39   :  { %704 = vmatpush3.bf16.msra.mxu1 %v785_v31 }
  0x3a   :  { %657 = vmatpush3.bf16.msra.mxu0 %v776_v25  ;;  %705 = vmatprep.subr.bf16.mxu1 %v875_v0 }
  0x3b   :  { %711 = vmatprep.subr.bf16.mxu0 %v875_v0 }
  0x3d   :  { %243 = vmatmul.mubr.bf16.vlgmr.msra.gmra.mxu0 %v76_v28  ;;  %706 = vmatpush3.bf16.msra.mxu1 %v786_v32 }
  0x3e   :  { %731 = vmatprep.subr.bf16.mxu1 %v875_v0  ;;  %727 = vmatprep.mubr.msk.bf16.mxu0 %vm876_vm0, %v875_v0 }
  0x3f   :  { %712 = vmatpush3.bf16.msra.mxu0 %v787_v33 }
  0x40   :  { %713 = vmatprep.subr.bf16.mxu0 %v875_v0 }
  0x43   :  { %714 = vmatpush3.bf16.msra.mxu0 %v788_v34 }
  0x44   :  { %715 = vmatprep.subr.bf16.mxu0 %v875_v0 }
  0x47   :  { %716 = vmatpush3.bf16.msra.mxu0 %v789_v35 }
  0x48   :  { %717 = vmatprep.subr.bf16.mxu0 %v875_v0 }
  0x4b   :  { %718 = vmatpush3.bf16.msra.mxu0 %v790_v36 }
  0x4c   :  { %719 = vmatprep.subr.bf16.mxu0 %v875_v0 }
  0x4f   :  { %720 = vmatpush3.bf16.msra.mxu0 %v791_v37 }
  0x50   :  { %721 = vmatprep.subr.bf16.mxu0 %v875_v0 }
  0x53   :  { %722 = vmatpush3.bf16.msra.mxu0 %v792_v38 }
  0x54   :  { %723 = vmatprep.subr.bf16.mxu0 %v875_v0 }
  0x57   :  { %724 = vmatpush3.bf16.msra.mxu0 %v793_v50 }
  0x58   :  { %725 = vmatprep.subr.bf16.mxu0 %v875_v0 }
  0x5b   :  { %726 = vmatpush3.bf16.msra.mxu0 %v794_v51 }
  0xfd   :  { %v658_v41 = vpop.f32.mrf.mxu0 }
  0xff   :  { %v659_v43 = vpop.f32.mrf.mxu0 }
 0x100   :  { %v660_v44 = vadd.f32 %v659_v43, %v658_v41 }
 0x101   :  { %v661_v45 = vpop.f32.mrf.mxu0 }
 0x102   :  { %v245_v46 = vadd.f32 %v660_v44, %v113_v42 }
 0x103   :  { %v662_v47 = vpop.f32.mrf.mxu0 }
 0x104   :  { %v250_v48 = vmax.f32 %v245_v46, 0.0 }
 0x106   :  { %v251_v49 = vpack.c.bf16 %v250_v48, %v250_v48 }
 0x108   :  { %708 = vmatmul.mubr.bf16.vlgmr.msra.gmra.mxu1 %v251_v49 }
 0x109   :  { %747 = vmatprep.mubr.msk.bf16.mxu1 %vm876_vm0, %v875_v0  ;;  %732 = vmatpush3.bf16.msra.mxu1 %v795_v52 }
 0x10a   :  { %733 = vmatprep.subr.bf16.mxu1 %v875_v0 }
 0x10d   :  { %734 = vmatpush3.bf16.msra.mxu1 %v796_v53 }
 0x10e   :  { %735 = vmatprep.subr.bf16.mxu1 %v875_v0 }
 0x111   :  { %736 = vmatpush3.bf16.msra.mxu1 %v797_v54 }
 0x112   :  { %737 = vmatprep.subr.bf16.mxu1 %v875_v0 }
 0x115   :  { %738 = vmatpush3.bf16.msra.mxu1 %v798_v55 }
 0x116   :  { %739 = vmatprep.subr.bf16.mxu1 %v875_v0 }
 0x119   :  { %740 = vmatpush3.bf16.msra.mxu1 %v799_v56 }
 0x11a   :  { %741 = vmatprep.subr.bf16.mxu1 %v875_v0 }
 0x11d   :  { %742 = vmatpush3.bf16.msra.mxu1 %v800_v57 }
 0x11e   :  { %743 = vmatprep.subr.bf16.mxu1 %v875_v0 }
 0x121   :  { %744 = vmatpush3.bf16.msra.mxu1 %v801_v4 }
 0x122   :  { %745 = vmatprep.subr.bf16.mxu1 %v875_v0 }
 0x125   :  { %746 = vmatpush3.bf16.msra.mxu1 %v802_v5 }
 0x1c8   :  { %v354_v60 = vpop.f32.mrf.mxu1 }
 0x1c9   :  { %v355_v61 = vadd.f32 %v354_v60, %v271_v59 }
 0x1ca   :  { %v709_v62 = vpop.f32.mrf.mxu1 }
 0x1cb   :  { %v360_v63 = vmax.f32 %v355_v61, 0.0 }
 0x1cc   :  { %v357_v1 = vpop.f32.mrf.mxu1 }
 0x1cd   :  { %v361_v2 = vpack.c.bf16 %v360_v63, %v360_v63 }
 0x1ce   :  { %v710_v3 = vpop.f32.mrf.mxu1 }
 0x1cf   :  { %728 = vmatmul.mubr.bf16.vlgmr.msra.gmra.mxu0 %v361_v2 }
 0x28f   :  { %v465_v8 = vpop.f32.mrf.mxu0 }
 0x290   :  { %v466_v9 = vadd.f32 %v465_v8, %v382_v7 }
 0x291   :  { %v729_v11 = vpop.f32.mrf.mxu0 }
 0x292   :  { %v471_v12 = vmax.f32 %v466_v9, 0.0 }
 0x293   :  { %v468_v13 = vpop.f32.mrf.mxu0 }
 0x294   :  { %v472_v14 = vpack.c.bf16 %v471_v12, %v471_v12 }
 0x295   :  { %v730_v15 = vpop.f32.mrf.mxu0 }
 0x296   :  { %748 = vmatmul.mubr.bf16.vlgmr.msra.gmra.mxu1 %v472_v14 }
 0x356   :  { %v576_v18 = vpop.f32.mrf.mxu1 }
 0x357   :  { %v577_v19 = vadd.f32 %v576_v18, %v493_v17 }
 0x358   :  { %v749_v0 = vpop.f32.mrf.mxu1 }
 0x359   :  { %583 = vst.msk [vmem:[#allocation7] sm:$0xff] %vm582_vm1, %v577_v19 }
 0x35a   :  { %v579_v20 = vpop.f32.mrf.mxu1 }
 0x35c   :  { %v750_v21 = vpop.f32.mrf.mxu1 }
 0x35d   :  { %588 = vsyncadd [#allocation4], 96  ;;  %s877_s3 = smov [#allocation7]  }
 0x35e   :  { %s589_s30 = sshll.u32 %s877_s3, 4  ;;  %s590_s30 = int_to_ptr.vmem [resolvable:$true] %s589_s30 }
 0x35f   :  { %s845_s5 = scalar_lea.vmem %s590_s30, 32  ;;  %s849_s6 = scalar_lea.vmem %s590_s30, 128 }
 0x360   :  { %p846_p10 = scmp.ne.s32.totalorder %s590_s30, %s845_s5  ;;  %p850_p11 = scmp.lt.s32.totalorder %s590_s30, %s590_s30 }
 0x361   :  { %p851_p12 = scmp.lt.s32.totalorder %s849_s6, %s845_s5 }
 0x363   :  { %p852_p13 = por %p851_p12, %p850_p11 }
 0x365   :  { %p853_p0 = pnand %p852_p13, %p846_p10 }
 0x367   :  { %856 = shalt.err (!%p853_p0)
}
 0x368   :  { %s878_s7 = smov 32   ;;  %s879_s8 = smov 2  }
 0x369   :  { %595 = dma.vmem_to_hbm [thread:$0]  %s590_s30, 32, %s963_s4, [#allocation4], %s878_s7, %s878_s7, %s879_s8  }
 0x36a   :  { %869 = dma.done.wait [#allocation4], 128  }
 0x36b   :  { %870 = vsyncadd [#allocation4], 4294967168 }
 0x36c   :  { %599 = vsyncpa [#allocation3], 1 }
 0x36d   :  { %600 = vsyncpa [#allocation6], 1 }
 0x36e   :  { %601 = vsyncpa [#allocation4], 1 }

</bundles_post_ra>
